<compile_context>
chip_gen: v7x
topology: tpu7x:2x2x1
jax: 0.10.0
libtpu: 0.0.40
codegen_flags: <defaults>
</compile_context>

<pallas_src>
import functools

import jax
import jax.numpy as jnp
from jax import lax
from jax.experimental import pallas as pl
from jax.experimental.pallas import tpu as pltpu

LANES = 128
MAX_TILE_ROWS = 2048  # 2048 * 128 * 4 B = 1 MiB per input block


def _bce_dice_kernel(pred_ref, truth_ref, out_ref, acc_ref, *,
                     n_valid, tile_rows, total_rows, last_ragged):
    i = pl.program_id(0)
    last = pl.num_programs(0) - 1

    @pl.when(i == 0)
    def _():
        acc_ref[...] = jnp.zeros_like(acc_ref)

    p = pred_ref[...].astype(jnp.float32)
    t = truth_ref[...].astype(jnp.float32)

    def partial_sums(p, t):
        # PyTorch BCELoss clamps log at -100; keep the general (soft-target)
        # form so semantics match nn.BCELoss exactly.
        log_p = jnp.maximum(jnp.log(p), -100.0)
        log_1mp = jnp.maximum(jnp.log(1.0 - p), -100.0)
        bce = -(t * log_p + (1.0 - t) * log_1mp)
        return bce, p, t, p * t

    def accumulate(vals):
        # Reduce each (tile_rows, 128) slab to (8, 128) with pure VALU adds and
        # fold it into the resident VMEM accumulator; the cross-lane (XLU)
        # reduction happens only once, in the epilogue.
        for idx, v in enumerate(vals):
            acc_ref[idx] += jnp.sum(v.reshape(-1, 8, LANES), axis=0)

    if last_ragged:
        @pl.when(i != last)
        def _():
            accumulate(partial_sums(p, t))

        @pl.when(i == last)
        def _():
            # Zero out rows past the end of the array (the Pallas edge block
            # holds undefined data there).  With p = t = 0 the BCE term is
            # exactly 0 after the -100 clamp, so zeroing the operands suffices.
            row = lax.broadcasted_iota(jnp.int32, p.shape, 0)
            valid = (i * tile_rows + row) < total_rows
            pm = jnp.where(valid, p, 0.0)
            tm = jnp.where(valid, t, 0.0)
            accumulate(partial_sums(pm, tm))
    else:
        accumulate(partial_sums(p, t))

    @pl.when(i == last)
    def _():
        bce_sum = jnp.sum(acc_ref[0])
        p_sum = jnp.sum(acc_ref[1])
        t_sum = jnp.sum(acc_ref[2])
        pt_sum = jnp.sum(acc_ref[3])
        bce_mean = bce_sum / jnp.float32(n_valid)
        dice = (2.0 * pt_sum + 1.0) / (p_sum + t_sum + 1.0)
        out_ref[0] = bce_mean + (1.0 - dice)


def bce_dice_loss(pred, target):
    """pred, target: identically shaped arrays (e.g. NCHW), values in [0, 1].

    Inputs may be f32 or narrower (e.g. bf16 pred / bf16 mask) -- they are
    upcast to f32 inside the kernel, so feeding narrower dtypes halves the
    HBM traffic of this bandwidth-bound reduction.
    """
    p = jnp.reshape(pred, (-1,))
    t = jnp.reshape(target, (-1,))
    n = p.shape[0]

    # Make the flat length a multiple of the 128-wide lane dim.  Zero padding
    # contributes exactly 0 to every partial sum (bce(0,0)=0 after the clamp),
    # so no masking is needed for it.  For typical NCHW inputs this is a no-op.
    rem = n % LANES
    if rem:
        p = jnp.pad(p, (0, LANES - rem))
        t = jnp.pad(t, (0, LANES - rem))
    rows = p.shape[0] // LANES
    p2 = p.reshape(rows, LANES)
    t2 = t.reshape(rows, LANES)

    # Big blocks (~1 MiB) for HBM-roofline streaming; small inputs use a single
    # block rounded up to the sublane multiple of 8.
    tile_rows = min(MAX_TILE_ROWS, ((rows + 7) // 8) * 8)
    num_tiles = pl.cdiv(rows, tile_rows)
    last_ragged = (rows % tile_rows) != 0

    kernel = functools.partial(
        _bce_dice_kernel,
        n_valid=n, tile_rows=tile_rows, total_rows=rows, last_ragged=last_ragged)

    bytes_accessed = n * (p2.dtype.itemsize + t2.dtype.itemsize) + 4
    out = pl.pallas_call(
        kernel,
        out_shape=jax.ShapeDtypeStruct((1,), jnp.float32),
        grid_spec=pltpu.PrefetchScalarGridSpec(
            num_scalar_prefetch=0,
            grid=(num_tiles,),
            in_specs=[
                pl.BlockSpec((tile_rows, LANES), lambda i: (i, 0)),
                pl.BlockSpec((tile_rows, LANES), lambda i: (i, 0)),
            ],
            out_specs=pl.BlockSpec(memory_space=pltpu.SMEM),
            scratch_shapes=[pltpu.VMEM((4, 8, LANES), jnp.float32)],
        ),
        compiler_params=pltpu.CompilerParams(
            dimension_semantics=("arbitrary",),
        ),
        cost_estimate=pl.CostEstimate(
            flops=10 * n, transcendentals=2 * n, bytes_accessed=bytes_accessed),
    )(p2, t2)
    return out[0]


def _reference(pred, target):
    p = jnp.reshape(pred, (-1,)).astype(jnp.float32)
    t = jnp.reshape(target, (-1,)).astype(jnp.float32)
    log_p = jnp.maximum(jnp.log(p), -100.0)
    log_1mp = jnp.maximum(jnp.log(1.0 - p), -100.0)
    bce = jnp.mean(-(t * log_p + (1.0 - t) * log_1mp))
    dice = (2.0 * jnp.sum(p * t) + 1.0) / (jnp.sum(p) + jnp.sum(t) + 1.0)
    return bce + (1.0 - dice)


if __name__ == "__main__":
    key = jax.random.PRNGKey(0)
    k1, k2 = jax.random.split(key)
    # input is a sigmoid-like probability map, target is a binary mask (NCHW)
    x = jax.nn.sigmoid(jax.random.normal(k1, (2, 4, 16, 16), dtype=jnp.float32))
    y = (jax.random.uniform(k2, (2, 4, 16, 16)) > 0.5).astype(jnp.float32)

    loss = jax.block_until_ready(bce_dice_loss(x, y))
    ref = jax.block_until_ready(_reference(x, y))

    assert jnp.allclose(loss, ref, rtol=1e-5, atol=1e-5), (loss, ref)
    print("KERNEL_OK")
</pallas_src>

<mosaic_0001>
module attributes {stable_mosaic.version = 11 : i64} {
  func.func @_bce_dice_kernel(%arg0: i32, %arg1: memref<16x128xf32, #tpu.memory_space<vmem>>, %arg2: memref<16x128xf32, #tpu.memory_space<vmem>>, %arg3: memref<1xf32, #tpu.memory_space<smem>>, %arg4: memref<4x8x128xf32, #tpu.memory_space<vmem>>) attributes {dimension_semantics = [#tpu.dimension_semantics<arbitrary>], iteration_bounds = array<i64: 1>, scalar_prefetch = 0 : i64, scratch_operands = 1 : i64, tpu.core_type = #tpu.core_type<tc>, window_params = [{transform_indices = @transform_0, window_bounds = array<i64: 16, 128>}, {transform_indices = @transform_1, window_bounds = array<i64: 16, 128>}, {transform_indices = @transform_2, window_bounds = array<i64: 1>}]} {
    %c0_i32 = arith.constant 0 : i32
    %0 = arith.cmpi eq, %arg0, %c0_i32 : i32
    %1 = arith.extui %0 : i1 to i32
    %c0_i32_0 = arith.constant 0 : i32
    %2 = arith.cmpi ne, %1, %c0_i32_0 : i32
    scf.if %2 {
      %cst_35 = arith.constant 0.000000e+00 : f32
      %56 = vector.broadcast %cst_35 : f32 to vector<4x8x128xf32>
      %c0_36 = arith.constant 0 : index
      %c0_37 = arith.constant 0 : index
      %c0_38 = arith.constant 0 : index
      %57 = vector.load %arg4[%c0_36, %c0_37, %c0_38] : memref<4x8x128xf32, #tpu.memory_space<vmem>>, vector<4x8x128xf32>
      tpu.vector_store %arg4[%c0_36, %c0_37, %c0_38], %56 {strides = array<i32>} : memref<4x8x128xf32, #tpu.memory_space<vmem>>, vector<4x8x128xf32>,
    } else {
    }
    %c0 = arith.constant 0 : index
    %c0_1 = arith.constant 0 : index
    %3 = vector.load %arg1[%c0, %c0_1] : memref<16x128xf32, #tpu.memory_space<vmem>>, vector<16x128xf32>
    %c0_2 = arith.constant 0 : index
    %c0_3 = arith.constant 0 : index
    %4 = vector.load %arg2[%c0_2, %c0_3] : memref<16x128xf32, #tpu.memory_space<vmem>>, vector<16x128xf32>
    %5 = math.log %3 : vector<16x128xf32>
    %cst = arith.constant -1.000000e+02 : f32
    %6 = vector.broadcast %cst : f32 to vector<16x128xf32>
    %7 = arith.maximumf %5, %6 : vector<16x128xf32>
    %cst_4 = arith.constant 1.000000e+00 : f32
    %8 = vector.broadcast %cst_4 : f32 to vector<16x128xf32>
    %9 = arith.subf %8, %3 : vector<16x128xf32>
    %10 = math.log %9 : vector<16x128xf32>
    %cst_5 = arith.constant -1.000000e+02 : f32
    %11 = vector.broadcast %cst_5 : f32 to vector<16x128xf32>
    %12 = arith.maximumf %10, %11 : vector<16x128xf32>
    %13 = arith.mulf %4, %7 : vector<16x128xf32>
    %cst_6 = arith.constant 1.000000e+00 : f32
    %14 = vector.broadcast %cst_6 : f32 to vector<16x128xf32>
    %15 = arith.subf %14, %4 : vector<16x128xf32>
    %16 = arith.mulf %15, %12 : vector<16x128xf32>
    %17 = arith.addf %13, %16 : vector<16x128xf32>
    %cst_7 = arith.constant 0.000000e+00 : f32
    %18 = vector.broadcast %cst_7 : f32 to vector<16x128xf32>
    %19 = arith.subf %18, %17 : vector<16x128xf32>
    %20 = arith.mulf %3, %4 : vector<16x128xf32>
    %c0_8 = arith.constant 0 : index
    %c0_9 = arith.constant 0 : index
    %c0_10 = arith.constant 0 : index
    %21 = vector.load %arg4[%c0_8, %c0_9, %c0_10] : memref<4x8x128xf32, #tpu.memory_space<vmem>>, vector<1x8x128xf32>
    %22 = vector.shape_cast %21 : vector<1x8x128xf32> to vector<8x128xf32>
    %23 = vector.shape_cast %19 : vector<16x128xf32> to vector<2x8x128xf32>
    %cst_11 = arith.constant dense<0.000000e+00> : vector<8x128xf32>
    %24 = vector.multi_reduction <add>, %23, %cst_11 [0] : vector<2x8x128xf32> to vector<8x128xf32>
    %25 = arith.addf %22, %24 : vector<8x128xf32>
    %c0_12 = arith.constant 0 : index
    %c0_13 = arith.constant 0 : index
    %c0_14 = arith.constant 0 : index
    %26 = vector.load %arg4[%c0_12, %c0_13, %c0_14] : memref<4x8x128xf32, #tpu.memory_space<vmem>>, vector<1x8x128xf32>
    %27 = vector.shape_cast %26 : vector<1x8x128xf32> to vector<8x128xf32>
    %28 = vector.shape_cast %25 : vector<8x128xf32> to vector<1x8x128xf32>
    tpu.vector_store %arg4[%c0_12, %c0_13, %c0_14], %28 {strides = array<i32>} : memref<4x8x128xf32, #tpu.memory_space<vmem>>, vector<1x8x128xf32>,
    %c1 = arith.constant 1 : index
    %c0_15 = arith.constant 0 : index
    %c0_16 = arith.constant 0 : index
    %29 = vector.load %arg4[%c1, %c0_15, %c0_16] : memref<4x8x128xf32, #tpu.memory_space<vmem>>, vector<1x8x128xf32>
    %30 = vector.shape_cast %29 : vector<1x8x128xf32> to vector<8x128xf32>
    %31 = vector.shape_cast %3 : vector<16x128xf32> to vector<2x8x128xf32>
    %cst_17 = arith.constant dense<0.000000e+00> : vector<8x128xf32>
    %32 = vector.multi_reduction <add>, %31, %cst_17 [0] : vector<2x8x128xf32> to vector<8x128xf32>
    %33 = arith.addf %30, %32 : vector<8x128xf32>
    %c1_18 = arith.constant 1 : index
    %c0_19 = arith.constant 0 : index
    %c0_20 = arith.constant 0 : index
    %34 = vector.load %arg4[%c1_18, %c0_19, %c0_20] : memref<4x8x128xf32, #tpu.memory_space<vmem>>, vector<1x8x128xf32>
    %35 = vector.shape_cast %34 : vector<1x8x128xf32> to vector<8x128xf32>
    %36 = vector.shape_cast %33 : vector<8x128xf32> to vector<1x8x128xf32>
    tpu.vector_store %arg4[%c1_18, %c0_19, %c0_20], %36 {strides = array<i32>} : memref<4x8x128xf32, #tpu.memory_space<vmem>>, vector<1x8x128xf32>,
    %c2 = arith.constant 2 : index
    %c0_21 = arith.constant 0 : index
    %c0_22 = arith.constant 0 : index
    %37 = vector.load %arg4[%c2, %c0_21, %c0_22] : memref<4x8x128xf32, #tpu.memory_space<vmem>>, vector<1x8x128xf32>
    %38 = vector.shape_cast %37 : vector<1x8x128xf32> to vector<8x128xf32>
    %39 = vector.shape_cast %4 : vector<16x128xf32> to vector<2x8x128xf32>
    %cst_23 = arith.constant dense<0.000000e+00> : vector<8x128xf32>
    %40 = vector.multi_reduction <add>, %39, %cst_23 [0] : vector<2x8x128xf32> to vector<8x128xf32>
    %41 = arith.addf %38, %40 : vector<8x128xf32>
    %c2_24 = arith.constant 2 : index
    %c0_25 = arith.constant 0 : index
    %c0_26 = arith.constant 0 : index
    %42 = vector.load %arg4[%c2_24, %c0_25, %c0_26] : memref<4x8x128xf32, #tpu.memory_space<vmem>>, vector<1x8x128xf32>
    %43 = vector.shape_cast %42 : vector<1x8x128xf32> to vector<8x128xf32>
    %44 = vector.shape_cast %41 : vector<8x128xf32> to vector<1x8x128xf32>
    tpu.vector_store %arg4[%c2_24, %c0_25, %c0_26], %44 {strides = array<i32>} : memref<4x8x128xf32, #tpu.memory_space<vmem>>, vector<1x8x128xf32>,
    %c3 = arith.constant 3 : index
    %c0_27 = arith.constant 0 : index
    %c0_28 = arith.constant 0 : index
    %45 = vector.load %arg4[%c3, %c0_27, %c0_28] : memref<4x8x128xf32, #tpu.memory_space<vmem>>, vector<1x8x128xf32>
    %46 = vector.shape_cast %45 : vector<1x8x128xf32> to vector<8x128xf32>
    %47 = vector.shape_cast %20 : vector<16x128xf32> to vector<2x8x128xf32>
    %cst_29 = arith.constant dense<0.000000e+00> : vector<8x128xf32>
    %48 = vector.multi_reduction <add>, %47, %cst_29 [0] : vector<2x8x128xf32> to vector<8x128xf32>
    %49 = arith.addf %46, %48 : vector<8x128xf32>
    %c3_30 = arith.constant 3 : index
    %c0_31 = arith.constant 0 : index
    %c0_32 = arith.constant 0 : index
    %50 = vector.load %arg4[%c3_30, %c0_31, %c0_32] : memref<4x8x128xf32, #tpu.memory_space<vmem>>, vector<1x8x128xf32>
    %51 = vector.shape_cast %50 : vector<1x8x128xf32> to vector<8x128xf32>
    %52 = vector.shape_cast %49 : vector<8x128xf32> to vector<1x8x128xf32>
    tpu.vector_store %arg4[%c3_30, %c0_31, %c0_32], %52 {strides = array<i32>} : memref<4x8x128xf32, #tpu.memory_space<vmem>>, vector<1x8x128xf32>,
    %c0_i32_33 = arith.constant 0 : i32
    %53 = arith.cmpi eq, %arg0, %c0_i32_33 : i32
    %54 = arith.extui %53 : i1 to i32
    %c0_i32_34 = arith.constant 0 : i32
    %55 = arith.cmpi ne, %54, %c0_i32_34 : i32
    scf.if %55 {
      %c0_35 = arith.constant 0 : index
      %c0_36 = arith.constant 0 : index
      %c0_37 = arith.constant 0 : index
      %56 = vector.load %arg4[%c0_35, %c0_36, %c0_37] : memref<4x8x128xf32, #tpu.memory_space<vmem>>, vector<1x8x128xf32>
      %57 = vector.shape_cast %56 : vector<1x8x128xf32> to vector<8x128xf32>
      %58 = vector.shape_cast %57 : vector<8x128xf32> to vector<1x8x128xf32>
      %cst_38 = arith.constant dense<0.000000e+00> : vector<1xf32>
      %59 = vector.multi_reduction <add>, %58, %cst_38 [1, 2] : vector<1x8x128xf32> to vector<1xf32>
      %60 = vector.shape_cast %59 : vector<1xf32> to vector<1x1x1xf32>
      %61 = vector.extract %60[0, 0, 0] : f32 from vector<1x1x1xf32>
      %c1_39 = arith.constant 1 : index
      %c0_40 = arith.constant 0 : index
      %c0_41 = arith.constant 0 : index
      %62 = vector.load %arg4[%c1_39, %c0_40, %c0_41] : memref<4x8x128xf32, #tpu.memory_space<vmem>>, vector<1x8x128xf32>
      %63 = vector.shape_cast %62 : vector<1x8x128xf32> to vector<8x128xf32>
      %64 = vector.shape_cast %63 : vector<8x128xf32> to vector<1x8x128xf32>
      %cst_42 = arith.constant dense<0.000000e+00> : vector<1xf32>
      %65 = vector.multi_reduction <add>, %64, %cst_42 [1, 2] : vector<1x8x128xf32> to vector<1xf32>
      %66 = vector.shape_cast %65 : vector<1xf32> to vector<1x1x1xf32>
      %67 = vector.extract %66[0, 0, 0] : f32 from vector<1x1x1xf32>
      %c2_43 = arith.constant 2 : index
      %c0_44 = arith.constant 0 : index
      %c0_45 = arith.constant 0 : index
      %68 = vector.load %arg4[%c2_43, %c0_44, %c0_45] : memref<4x8x128xf32, #tpu.memory_space<vmem>>, vector<1x8x128xf32>
      %69 = vector.shape_cast %68 : vector<1x8x128xf32> to vector<8x128xf32>
      %70 = vector.shape_cast %69 : vector<8x128xf32> to vector<1x8x128xf32>
      %cst_46 = arith.constant dense<0.000000e+00> : vector<1xf32>
      %71 = vector.multi_reduction <add>, %70, %cst_46 [1, 2] : vector<1x8x128xf32> to vector<1xf32>
      %72 = vector.shape_cast %71 : vector<1xf32> to vector<1x1x1xf32>
      %73 = vector.extract %72[0, 0, 0] : f32 from vector<1x1x1xf32>
      %c3_47 = arith.constant 3 : index
      %c0_48 = arith.constant 0 : index
      %c0_49 = arith.constant 0 : index
      %74 = vector.load %arg4[%c3_47, %c0_48, %c0_49] : memref<4x8x128xf32, #tpu.memory_space<vmem>>, vector<1x8x128xf32>
      %75 = vector.shape_cast %74 : vector<1x8x128xf32> to vector<8x128xf32>
      %76 = vector.shape_cast %75 : vector<8x128xf32> to vector<1x8x128xf32>
      %cst_50 = arith.constant dense<0.000000e+00> : vector<1xf32>
      %77 = vector.multi_reduction <add>, %76, %cst_50 [1, 2] : vector<1x8x128xf32> to vector<1xf32>
      %78 = vector.shape_cast %77 : vector<1xf32> to vector<1x1x1xf32>
      %79 = vector.extract %78[0, 0, 0] : f32 from vector<1x1x1xf32>
      %cst_51 = arith.constant 2.048000e+03 : f32
      %80 = arith.divf %61, %cst_51 : f32
      %cst_52 = arith.constant 2.000000e+00 : f32
      %81 = arith.mulf %cst_52, %79 : f32
      %cst_53 = arith.constant 1.000000e+00 : f32
      %82 = arith.addf %81, %cst_53 : f32
      %83 = arith.addf %67, %73 : f32
      %cst_54 = arith.constant 1.000000e+00 : f32
      %84 = arith.addf %83, %cst_54 : f32
      %85 = arith.divf %82, %84 : f32
      %cst_55 = arith.constant 1.000000e+00 : f32
      %86 = arith.subf %cst_55, %85 : f32
      %87 = arith.addf %80, %86 : f32
      %c0_56 = arith.constant 0 : index
      %88 = memref.load %arg3[%c0_56] : memref<1xf32, #tpu.memory_space<smem>>
      memref.store %87, %arg3[%c0_56] : memref<1xf32, #tpu.memory_space<smem>>
    } else {
    }
    return
  }
  func.func @transform_0(%arg0: i32) -> (i32, i32) {
    %c0_i32 = arith.constant 0 : i32
    %c0_i32_0 = arith.constant 0 : i32
    return %arg0, %c0_i32 : i32, i32
  }
  func.func @transform_1(%arg0: i32) -> (i32, i32) {
    %c0_i32 = arith.constant 0 : i32
    %c0_i32_0 = arith.constant 0 : i32
    return %arg0, %c0_i32 : i32, i32
  }
  func.func @transform_2(%arg0: i32) -> i32 {
    %c0_i32 = arith.constant 0 : i32
    %c0_i32_0 = arith.constant 0 : i32
    return %c0_i32 : i32
  }
}

</mosaic_0001>

<bundles_post_ra>
// kernel: tpu_custom_call.1
= control target key start
LH: loop header
LB: loop body
LE: loop exit
PB: predicated region body
PF: predicated region fallthrough
CT: control target
= control target key end

     0   :  { %7 = vsyncpa [#allocation4], 0  ;;  %s311_s0 = inlined_call_operand.hbm [shape: f32[16,128], index: 0, kind: input, shape index: {}]   ;;  %s312_s1 = inlined_call_operand.hbm [shape: f32[16,128], index: 1, kind: input, shape index: {}]   ;;  %s313_s2 = inlined_call_operand.hbm [shape: f32[1], index: 2, kind: output, shape index: {}]  }
   0x1   :  { %8 = vsyncpa [#allocation7], 0 }
   0x2   :  { %9 = vsyncpa [#allocation5], 0  ;;  %s255_s9 = smov [#allocation3]   ;;  %s195_s13 = scalar_lea.hbm %s311_s0, 256 }
   0x3   :  { %s15_s10 = sshll.u32 %s255_s9, 4  ;;  %p196_p0 = scmp.ne.s32.totalorder %s311_s0, %s195_s13  ;;  %s16_s10 = int_to_ptr.vmem [resolvable:$true] %s15_s10 }
   0x4   :  { %p199_p1 = scmp.lt.u32.totalorder %s195_s13, %s311_s0 }
   0x6   :  { %p201_p2 = pnand %p199_p1, %p196_p0 }
   0x8   :  { %204 = shalt.err (!%p201_p2)
}
   0x9   :  { %s205_s18 = scalar_lea.vmem %s16_s10, 256  ;;  %p210_p4 = scmp.lt.s32.totalorder %s16_s10, %s16_s10 }
   0xa   :  { %p206_p3 = scmp.ne.s32.totalorder %s16_s10, %s205_s18  ;;  %p211_p5 = scmp.lt.s32.totalorder %s205_s18, %s205_s18 }
   0xc   :  { %p212_p6 = por %p211_p5, %p210_p4 }
   0xe   :  { %p213_p7 = pnand %p212_p6, %p206_p3 }
  0x10   :  { %216 = shalt.err (!%p213_p7)
}
  0x11   :  { %s256_s19 = smov 128   ;;  %s257_s20 = smov 8  }
  0x12   :  { %21 = dma.hbm_to_vmem [thread:$0]  %s311_s0, 256, %s16_s10, [#allocation4], %s256_s19, %s256_s19, %s257_s20  }
  0x13   :  { %s258_s23 = smov [#allocation6]   ;;  %s217_s27 = scalar_lea.hbm %s312_s1, 256 }
  0x14   :  { %s27_s24 = sshll.u32 %s258_s23, 4  ;;  %p218_p8 = scmp.ne.s32.totalorder %s312_s1, %s217_s27  ;;  %s28_s24 = int_to_ptr.vmem [resolvable:$true] %s27_s24 }
  0x15   :  { %p221_p9 = scmp.lt.u32.totalorder %s217_s27, %s312_s1 }
  0x17   :  { %p223_p10 = pnand %p221_p9, %p218_p8 }
  0x19   :  { %226 = shalt.err (!%p223_p10)
}
  0x1a   :  { %s227_s4 = scalar_lea.vmem %s28_s24, 256  ;;  %p232_p12 = scmp.lt.s32.totalorder %s28_s24, %s28_s24 }
  0x1b   :  { %p228_p11 = scmp.ne.s32.totalorder %s28_s24, %s227_s4  ;;  %p233_p13 = scmp.lt.s32.totalorder %s227_s4, %s227_s4 }
  0x1d   :  { %p234_p0 = por %p233_p13, %p232_p12 }
  0x1f   :  { %p235_p1 = pnand %p234_p0, %p228_p11 }
  0x21   :  { %238 = shalt.err (!%p235_p1)
}
  0x22   :  { %33 = dma.hbm_to_vmem [thread:$0]  %s312_s1, 256, %s28_s24, [#allocation7], %s256_s19, %s256_s19, %s257_s20  }
  0x23   :  { %249 = dma.done.wait [#allocation4], 256  }
  0x24   :  { %250 = vsyncadd [#allocation4], 4294967040 }
  0x25   :  { %251 = dma.done.wait [#allocation7], 256  }
  0x26   :  { %252 = vsyncadd [#allocation7], 4294967040  ;;  %v50_v0 = vld [vmem:[#allocation6] sm:$0xff]  ;;  %v51_v1 = vld [vmem:[#allocation6 + $0x8] sm:$0xff]  ;;  %s239_s20 = scalar_lea.hbm %s313_s2, 16 }
  0x27   :  { %v48_v2 = vld [vmem:[#allocation3] sm:$0xff]  ;;  %v89_v3 = vadd.f32 %v51_v1, %v50_v0  ;;  %v49_v4 = vld [vmem:[#allocation3 + $0x8] sm:$0xff]  ;;  %v68_v18 = vsub.f32 1.0, %v50_v0  ;;  %v69_v21 = vsub.f32 1.0, %v51_v1  ;;  %p240_p2 = scmp.ne.s32.totalorder %s313_s2, %s239_s20  ;;  %p243_p3 = scmp.lt.u32.totalorder %s239_s20, %s313_s2 }
  0x28   :  { %185 = vlog2.f32 %v48_v2  ;;  %v58_v5 = vsub.f32 1.0, %v48_v2  ;;  %v59_v6 = vsub.f32 1.0, %v49_v4  ;;  %v76_v7 = vmul.f32 %v50_v0, %v48_v2 }
  0x29   :  { %187 = vlog2.f32 %v49_v4  ;;  %121 = vadd.xlane.f32.xlu1 %v89_v3  ;;  %v77_v8 = vmul.f32 %v51_v1, %v49_v4  ;;  %v84_v33 = vadd.f32 %v49_v4, %v48_v2  ;;  %p245_p4 = pnand %p243_p3, %p240_p2 }
  0x2a   :  { %189 = vlog2.f32 %v58_v5 }
  0x2b   :  { %191 = vlog2.f32 %v59_v6  ;;  %v94_v9 = vadd.f32 %v77_v8, %v76_v7 }
  0x2d   :  { %131 = vadd.xlane.f32.xlu1 %v94_v9 }
  0x32   :  { %v186_v10 = vpop.eup %185 }
  0x33   :  { %v188_v11 = vpop.eup %187  ;;  %v53_v12 = vmul.f32 0.6931472, %v186_v10 }
  0x34   :  { %v190_v13 = vpop.eup %189  ;;  %v55_v14 = vmul.f32 0.6931472, %v188_v11 }
  0x35   :  { %v192_v15 = vpop.eup %191  ;;  %v56_v16 = vmax.f32 %v53_v12, -100.0  ;;  %v61_v17 = vmul.f32 0.6931472, %v190_v13 }
  0x36   :  { %v57_v19 = vmax.f32 %v55_v14, -100.0  ;;  %v63_v20 = vmul.f32 0.6931472, %v192_v15 }
  0x37   :  { %v64_v22 = vmax.f32 %v61_v17, -100.0  ;;  %v66_v23 = vmul.f32 %v56_v16, %v50_v0 }
  0x38   :  { %v65_v24 = vmax.f32 %v63_v20, -100.0  ;;  %v67_v25 = vmul.f32 %v57_v19, %v51_v1 }
  0x39   :  { %v70_v26 = vmul.f32 %v68_v18, %v64_v22 }
  0x3a   :  { %v71_v27 = vmul.f32 %v69_v21, %v65_v24 }
  0x3b   :  { %v72_v28 = vadd.f32 %v70_v26, %v66_v23 }
  0x3c   :  { %v73_v29 = vadd.f32 %v71_v27, %v67_v25 }
  0x3d   :  { %v74_v30 = vsub.f32 0.0, %v72_v28 }
  0x3e   :  { %v75_v31 = vsub.f32 0.0, %v73_v29 }
  0x40   :  { %v79_v32 = vadd.f32 %v75_v31, %v74_v30 }
  0x42   :  { %101 = vadd.xlane.f32.xlu0 %v79_v32 }
  0x46   :  { %111 = vadd.xlane.f32.xlu0 %v84_v33 }
  0xb6   :  { %v122_v34 = vpop.xlane.xlu1 %121 }
  0xb7   :  { %v123_v37 = vrot.slane %v122_v34, 4 }
  0xb9   :  { %v124_v39 = vadd.f32 %v123_v37, %v122_v34 }
  0xba   :  { %v132_v35 = vpop.xlane.xlu1 %131 }
  0xbb   :  { %v133_v36 = vrot.slane %v132_v35, 4  ;;  %v125_v44 = vrot.slane %v124_v39, 2 }
  0xbd   :  { %v134_v38 = vadd.f32 %v133_v36, %v132_v35  ;;  %v126_v51 = vadd.f32 %v125_v44, %v124_v39 }
  0xbf   :  { %v135_v43 = vrot.slane %v134_v38, 2  ;;  %v127_v57 = vrot.slane %v126_v51, 1 }
  0xc1   :  { %v136_v50 = vadd.f32 %v135_v43, %v134_v38  ;;  %v128_v61 = vadd.f32 %v127_v57, %v126_v51 }
  0xc3   :  { %v137_v56 = vrot.slane %v136_v50, 1 }
  0xc5   :  { %v138_v60 = vadd.f32 %v137_v56, %v136_v50 }
  0xcf   :  { %v102_v40 = vpop.xlane.xlu0 %101 }
  0xd0   :  { %v103_v41 = vrot.slane %v102_v40, 4 }
  0xd2   :  { %v104_v42 = vadd.f32 %v103_v41, %v102_v40 }
  0xd3   :  { %v112_v45 = vpop.xlane.xlu0 %111 }
  0xd4   :  { %v105_v46 = vrot.slane %v104_v42, 2  ;;  %v113_v47 = vrot.slane %v112_v45, 4 }
  0xd6   :  { %v114_v48 = vadd.f32 %v113_v47, %v112_v45  ;;  %v106_v49 = vadd.f32 %v105_v46, %v104_v42 }
  0xd8   :  { %v115_v52 = vrot.slane %v114_v48, 2  ;;  %v107_v53 = vrot.slane %v106_v49, 1 }
  0xda   :  { %v116_v54 = vadd.f32 %v115_v52, %v114_v48  ;;  %v108_v55 = vadd.f32 %v107_v53, %v106_v49 }
  0xdc   :  { %170 = vpush %v108_v55  ;;  %v117_v58 = vrot.slane %v116_v54, 1 }
  0xde   :  { %v118_v59 = vadd.f32 %v117_v58, %v116_v54 }
  0xe0   :  { %172 = vpush %v118_v59 }
  0xe1   :  { %174 = vpush %v128_v61 }
  0xe2   :  { %176 = vpush %v138_v60 }
 0x10d   :  { %s171_s1 = spop %170 }
 0x10e   :  { %s142_s15 = smul.f32 0.00048828125, %s171_s1 }
 0x111   :  { %s173_s6 = spop %172 }
 0x112   :  { %s175_s7 = spop %174 }
 0x113   :  { %s145_s8 = sadd.f32 %s175_s7, %s173_s6  ;;  %s177_s10 = spop %176 }
 0x114   :  { %s143_s11 = smul.f32 2.0, %s177_s10 }
 0x115   :  { %s146_s9 = sadd.f32 1.0, %s145_s8 }
 0x116   :  { %s144_s12 = sadd.f32 1.0, %s143_s11 }
 0x117   :  { %v147_v62 = vstv %s146_s9 }
 0x118   :  { %193 = vrcp.f32 %v147_v62 }
 0x122   :  { %v194_v63 = vpop.eup %193 }
 0x123   :  { %178 = vpush %v194_v63 }
 0x154   :  { %s179_s13 = spop %178 }
 0x155   :  { %s150_s14 = smul.f32 %s179_s13, %s144_s12 }
 0x157   :  { %s151_s16 = ssub.f32 1.0, %s150_s14 }
 0x159   :  { %s152_s17 = sadd.f32 %s151_s16, %s142_s15 }
 0x15b   :  { %154 = sst [smem:[#allocation8]] %s152_s17 }
 0x15c   :  { %248 = shalt.err (!%p245_p4)
}
 0x15d   :  { %s259_s25 = smov [#allocation8]  }
 0x15e   :  { %162 = dma.smem_to_hbm %s259_s25, 16, %s313_s2, [#allocation5]  }
 0x15f   :  { %253 = dma.done.wait [#allocation5], 16  }
 0x160   :  { %254 = vsyncadd [#allocation5], 4294967280 }
 0x161   :  { %166 = sfence }
 0x162   :  { %167 = vsyncpa [#allocation4], 1 }
 0x163   :  { %168 = vsyncpa [#allocation7], 1 }
 0x164   :  { %169 = vsyncpa [#allocation5], 1 }

</bundles_post_ra>
